<compile_context>
chip_gen: v5e
topology: v5e:2x2
jax: 0.10.0
libtpu: 0.0.40
codegen_flags: <defaults>
</compile_context>

<pallas_src>
import jax
import jax.numpy as jnp
from jax.experimental import pallas as pl
from jax.experimental.pallas import tpu as pltpu


def _round_up(n, m):
    return ((n + m - 1) // m) * m


def _pick_block_batch(b_rows, cap_rows):
    """Largest multiple of 8 <= cap_rows that divides b_rows (b_rows % 8 == 0).

    Prefers >= 2 balanced grid steps when the batch allows it, so the
    "parallel" batch axis can be sharded across v7x's two TensorCores.
    """
    cap = max(8, min(cap_rows, b_rows))
    best = 8
    for d in range(8, cap + 1, 8):
        if b_rows % d == 0:
            best = d
    if best == b_rows and b_rows >= 16 and (b_rows // 2) % 8 == 0:
        best = b_rows // 2  # two balanced steps instead of one
    return best


def _logreg_kernel(x_ref, w_ref, b_ref, o_ref):
    # x_ref: (TM, D_in)  w_ref: (D_in, D_out)  b_ref: (1, D_out)  o_ref: (TM, D_out)
    # MXU matmul with f32 accumulation; weight was pre-transposed in the wrapper,
    # so there is no in-kernel transpose / relayout.
    z = jnp.dot(x_ref[...], w_ref[...], preferred_element_type=jnp.float32)
    z = z + b_ref[...]  # bias broadcast over the batch tile
    # sigmoid(z) = 0.5 * (1 + tanh(z / 2)): a single EUP transcendental per
    # element, no exp(-z) overflow, no approx-reciprocal error.
    o_ref[...] = (0.5 * (jnp.tanh(0.5 * z) + 1.0)).astype(o_ref.dtype)


def prepare_logreg_params(weight, bias):
    """One-time parameter prep, hoisted out of the per-call path.

    weight: (D_out, D_in) torch.nn.Linear layout  ->  (D_in, D_out)
    bias:   (D_out,)                              ->  (1, D_out)
    Cache / store these instead of re-transposing on every forward call.
    """
    return jnp.asarray(weight).T, jnp.asarray(bias).reshape(1, -1)


def logistic_regression_forward(x, w_t, b_2d, *, block_batch=None):
    """sigmoid(x @ w_t + b).  x: (B, D_in), w_t: (D_in, D_out), b_2d: (1, D_out)."""
    B, D_in = x.shape
    D_out = w_t.shape[1]
    out_dtype = x.dtype

    if block_batch is None:
        if B % 8 != 0 and B <= 4096:
            # Small ragged batch: one full-array block (block dim == full array
            # dim is always a legal layout) -> no pad copy, no post-call slice.
            block_batch = B
        else:
            itemsize_x = x.dtype.itemsize
            itemsize_o = jnp.dtype(out_dtype).itemsize
            w_bytes = (w_t.size * w_t.dtype.itemsize
                       + b_2d.size * b_2d.dtype.itemsize)
            # 12 MiB budget stays under even v5e's 16 MiB default scoped VMEM
            # (32 MiB on v6e/v7x).  x/out tiles are double-buffered by the
            # pipeline; weight/bias blocks get 2 buffers by default as well.
            budget = 12 * 1024 * 1024
            per_row = 2 * (D_in * itemsize_x + D_out * itemsize_o)
            cap_rows = max(8, min(4096, ((budget - 2 * w_bytes) // per_row) // 8 * 8))
            block_batch = _pick_block_batch(_round_up(B, 8), cap_rows)

    # Pad the batch only if strictly necessary (then by < block_batch rows;
    # zero rows in the common case where block_batch divides B).
    B_run = _round_up(B, block_batch) if B % block_batch else B
    if B_run != B:
        # TODO(synk): handle the ragged tail with an in-kernel masked store
        # instead of this small pad copy.
        x = jnp.pad(x, ((0, B_run - B), (0, 0)))

    grid = (B_run // block_batch,)

    cost = pl.CostEstimate(
        flops=2 * B_run * D_in * D_out,
        transcendentals=B_run * D_out,
        bytes_accessed=(B_run * D_in * x.dtype.itemsize
                        + w_t.size * w_t.dtype.itemsize
                        + b_2d.size * b_2d.dtype.itemsize
                        + B_run * D_out * jnp.dtype(out_dtype).itemsize),
    )

    out = pl.pallas_call(
        _logreg_kernel,
        out_shape=jax.ShapeDtypeStruct((B_run, D_out), out_dtype),
        grid_spec=pltpu.PrefetchScalarGridSpec(
            num_scalar_prefetch=0,
            grid=grid,
            in_specs=[
                # x: tiled over batch, auto double-buffered DMA.
                pl.BlockSpec((block_batch, D_in), lambda i: (i, 0)),
                # Weight / bias: same block every grid step -> VMEM-resident.
                # TODO(synk): for large D_in*D_out add pipeline_mode=pl.Buffered(1)
                # (constant index_map needs no double buffer) or a D_out grid axis.
                pl.BlockSpec((D_in, D_out), lambda i: (0, 0)),
                pl.BlockSpec((1, D_out), lambda i: (0, 0)),
            ],
            out_specs=pl.BlockSpec((block_batch, D_out), lambda i: (i, 0)),
        ),
        compiler_params=pltpu.CompilerParams(
            dimension_semantics=("parallel",),
        ),
        cost_estimate=cost,
    )(x, w_t, b_2d)

    return out if B_run == B else out[:B]


if __name__ == "__main__":
    # Small shapes consistent with the module: input_dim=32, output_dim=16, batch=8.
    batch, input_dim, output_dim = 8, 32, 16

    key = jax.random.PRNGKey(0)
    kx, kw, kb = jax.random.split(key, 3)

    x = jax.random.normal(kx, (batch, input_dim), dtype=jnp.float32)
    # Deterministic init mimicking torch.nn.Linear's uniform(-1/sqrt(fan_in), 1/sqrt(fan_in)).
    bound = 1.0 / (input_dim ** 0.5)
    weight = jax.random.uniform(
        kw, (output_dim, input_dim), dtype=jnp.float32, minval=-bound, maxval=bound
    )
    bias = jax.random.uniform(
        kb, (output_dim,), dtype=jnp.float32, minval=-bound, maxval=bound
    )

    # Parameter prep done ONCE (hoisted out of the per-call path).
    w_t, b_2d = prepare_logreg_params(weight, bias)

    out = logistic_regression_forward(x, w_t, b_2d)
    out = jax.block_until_ready(out)

    # Reference check in plain JAX (exact-form sigmoid -> tight tolerance).
    ref = jax.nn.sigmoid(x @ weight.T + bias)
    assert out.shape == (batch, output_dim)
    assert jnp.allclose(out, ref, atol=1e-5, rtol=1e-5)

    print("KERNEL_OK")
</pallas_src>

<mosaic_0001>
module attributes {stable_mosaic.version = 11 : i64} {
  func.func @_logreg_kernel(%arg0: i32, %arg1: memref<8x32xf32, #tpu.memory_space<vmem>>, %arg2: memref<32x16xf32, #tpu.memory_space<vmem>>, %arg3: memref<1x16xf32, #tpu.memory_space<vmem>>, %arg4: memref<8x16xf32, #tpu.memory_space<vmem>>) attributes {dimension_semantics = [#tpu.dimension_semantics<parallel>], iteration_bounds = array<i64: 1>, scalar_prefetch = 0 : i64, scratch_operands = 0 : i64, tpu.core_type = #tpu.core_type<tc>, window_params = [{transform_indices = @transform_0, window_bounds = array<i64: 8, 32>}, {pipeline_mode = #tpu.pipeline_mode<synchronous>, transform_indices = @transform_1, window_bounds = array<i64: 32, 16>}, {pipeline_mode = #tpu.pipeline_mode<synchronous>, transform_indices = @transform_2, window_bounds = array<i64: 1, 16>}, {transform_indices = @transform_3, window_bounds = array<i64: 8, 16>}]} {
    %c0 = arith.constant 0 : index
    %c0_0 = arith.constant 0 : index
    %0 = vector.load %arg1[%c0, %c0_0] : memref<8x32xf32, #tpu.memory_space<vmem>>, vector<8x32xf32>
    %c0_1 = arith.constant 0 : index
    %c0_2 = arith.constant 0 : index
    %1 = vector.load %arg2[%c0_1, %c0_2] : memref<32x16xf32, #tpu.memory_space<vmem>>, vector<32x16xf32>
    %cst = arith.constant dense<0.000000e+00> : vector<8x16xf32>
    %2 = tpu.matmul %0, %1, %cst {dimension_numbers = #tpu.dot_dimension_numbers<[1], [0], [0], [1], [0, 0, 1, 1], [], []>} : vector<8x32xf32>, vector<32x16xf32>, vector<8x16xf32> -> vector<8x16xf32>
    %c0_3 = arith.constant 0 : index
    %c0_4 = arith.constant 0 : index
    %3 = vector.load %arg3[%c0_3, %c0_4] : memref<1x16xf32, #tpu.memory_space<vmem>>, vector<1x16xf32>
    %4 = vector.broadcast %3 : vector<1x16xf32> to vector<8x16xf32>
    %5 = arith.addf %2, %4 : vector<8x16xf32>
    %cst_5 = arith.constant 5.000000e-01 : f32
    %6 = vector.broadcast %cst_5 : f32 to vector<8x16xf32>
    %7 = arith.mulf %6, %5 : vector<8x16xf32>
    %8 = math.tanh %7 : vector<8x16xf32>
    %cst_6 = arith.constant 1.000000e+00 : f32
    %9 = vector.broadcast %cst_6 : f32 to vector<8x16xf32>
    %10 = arith.addf %8, %9 : vector<8x16xf32>
    %cst_7 = arith.constant 5.000000e-01 : f32
    %11 = vector.broadcast %cst_7 : f32 to vector<8x16xf32>
    %12 = arith.mulf %11, %10 : vector<8x16xf32>
    %c0_8 = arith.constant 0 : index
    %c0_9 = arith.constant 0 : index
    %13 = vector.load %arg4[%c0_8, %c0_9] : memref<8x16xf32, #tpu.memory_space<vmem>>, vector<8x16xf32>
    tpu.vector_store %arg4[%c0_8, %c0_9], %12 {strides = array<i32>} : memref<8x16xf32, #tpu.memory_space<vmem>>, vector<8x16xf32>,
    return
  }
  func.func @transform_0(%arg0: i32) -> (i32, i32) {
    %c0_i32 = arith.constant 0 : i32
    %c0_i32_0 = arith.constant 0 : i32
    return %arg0, %c0_i32 : i32, i32
  }
  func.func @transform_1(%arg0: i32) -> (i32, i32) {
    %c0_i32 = arith.constant 0 : i32
    %c0_i32_0 = arith.constant 0 : i32
    %c0_i32_1 = arith.constant 0 : i32
    return %c0_i32, %c0_i32_0 : i32, i32
  }
  func.func @transform_2(%arg0: i32) -> (i32, i32) {
    %c0_i32 = arith.constant 0 : i32
    %c0_i32_0 = arith.constant 0 : i32
    %c0_i32_1 = arith.constant 0 : i32
    return %c0_i32, %c0_i32_0 : i32, i32
  }
  func.func @transform_3(%arg0: i32) -> (i32, i32) {
    %c0_i32 = arith.constant 0 : i32
    %c0_i32_0 = arith.constant 0 : i32
    return %arg0, %c0_i32 : i32, i32
  }
}

</mosaic_0001>

<bundles_post_ra>
// kernel: tpu_custom_call.1
= control target key start
LH: loop header
LB: loop body
LE: loop exit
PB: predicated region body
PF: predicated region fallthrough
CT: control target
= control target key end

     0   :  { %s143_s0 = inlined_call_operand.vmem [shape: f32[8,32], index: 0, kind: input, shape index: {}]   ;;  %s144_s1 = inlined_call_operand.vmem [shape: f32[32,16], index: 1, kind: input, shape index: {}]   ;;  %s145_s2 = inlined_call_operand.vmem [shape: f32[1,16], index: 2, kind: input, shape index: {}]   ;;  %s146_s3 = inlined_call_operand.hbm [shape: f32[8,16], index: 3, kind: output, shape index: {}]  }
   0x1   :  { %v19_v0 = vld [vmem:[%s144_s1 + $0x18] sm:$0xff]  ;;  %v18_v1 = vld [vmem:[%s144_s1 + $0x10] sm:$0xff]  ;;  %v17_v2 = vld [vmem:[%s144_s1 + $0x8] sm:$0xff] }
   0x2   :  { %40 = vmatpush.msra.mxu0 %v19_v0 }
   0x3   :  { %8 = vsyncpa [#allocation3], 0  ;;  %v16_v3 = vld [vmem:[%s144_s1] sm:$0xff]  ;;  %vm24_vm0 = vcmask 261120   ;;  %s101_s24 = smov [#allocation2]   ;;  %s61_s27 = sshll.u32 %s146_s3, 4  ;;  %s62_s27 = int_to_ptr.hbm [resolvable:$true] %s61_s27 }
   0x4   :  { %41 = vmatpush.msra.mxu0 %v18_v1  ;;  %v15_v4 = vld [vmem:[%s143_s0] sm:$0xff]  ;;  %s59_s25 = sshll.u32 %s101_s24, 4  ;;  %vm52_vm1 = vcmask 130048   ;;  %s60_s25 = int_to_ptr.vmem [resolvable:$true] %s59_s25 }
   0x5   :  { %v72_v5 = vld [vmem:[%s145_s2] ss:$0 sm:$0xff] }
   0x6   :  { %42 = vmatpush.msra.mxu0 %v17_v2 }
   0x8   :  { %43 = vmatpush.msra.mxu0 %v16_v3 }
   0x9   :  { %70 = vmatmul.msk.f32.vlgmr.msra.gmra.mxu0 %vm24_vm0, %v15_v4 }
  0x86   :  { %v45_v6 = vpop.f32.mrf.mxu0 }
  0x87   :  { %v46_v7 = vadd.f32 %v72_v5, %v45_v6 }
  0x89   :  { %v48_v8 = vmul.f32 0.5, %v46_v7 }
  0x8b   :  { %73 = vtanh.f32 %v48_v8 }
  0x91   :  { %v74_v9 = vpop.eup %73 }
  0x92   :  { %v50_v10 = vadd.f32 1.0, %v74_v9 }
  0x94   :  { %v51_v11 = vmul.f32 0.5, %v50_v10 }
  0x96   :  { %53 = vst.msk [vmem:[#allocation2] sm:$0xff] %vm52_vm1, %v51_v11 }
  0x97   :  { %64 = dma.vmem_to_hbm [thread:$0]  %s60_s25, 128, %s62_s27, [#allocation3]  }
  0x98   :  { %99 = dma.done.wait [#allocation3], 128  }
  0x99   :  { %100 = vsyncadd [#allocation3], 4294967168 }
  0x9a   :  { %69 = vsyncpa [#allocation3], 1 }

</bundles_post_ra>
